<compile_context>
chip_gen: v6e
topology: v6e:2x2x1
jax: 0.10.0
libtpu: 0.0.40
codegen_flags: <defaults>
</compile_context>

<pallas_src>
import jax
import jax.numpy as jnp
from jax.experimental import pallas as pl
from jax.experimental.pallas import tpu as pltpu


def make_edi_weights(num_event_bins: int) -> jnp.ndarray:
    """Deterministic accumulation weights, shape (Cout=nb+1, Cin=nb). Reference only."""
    nb = num_event_bins
    w = jnp.zeros((nb + 1, nb), dtype=jnp.float32)
    half = nb // 2
    for i in range(half):
        w = w.at[i, i:half].set(-1.0)
    for i in range(half + 1, nb + 1):
        w = w.at[i, half:i].set(1.0)
    return w  # (Cout, Cin)


def _make_edi_kernel(num_event_bins: int):
    """Kernel with the EDI prefix-sum weight structure baked in as constants."""
    nb = num_event_bins
    half = nb // 2
    cout = nb + 1
    inv_cout = 1.0 / float(cout)

    def kernel(x_ref, out_ref):
        # x_ref : (Cin, TM)  float32, spatial in lanes
        # out_ref: (2,  TM)  row 0 = log integral, row 1 = second integral (mean)
        x = x_ref[...]
        tm = x.shape[-1]

        # Middle output channel has all-zero weights -> y == 0 -> exp == 1 (constant).
        acc = jnp.full((1, tm), 1.0, dtype=jnp.float32)

        # Negative prefix side: y[o] = -(x[o] + ... + x[half-1]),  o = half-1 .. 0
        run = jnp.zeros((1, tm), dtype=jnp.float32)
        for o in range(half - 1, -1, -1):
            run = run - x[o:o + 1, :]
            acc = acc + jnp.exp(jnp.clip(run, -40.0, 40.0))

        # Positive prefix side: y[o] = x[half] + ... + x[o-1],  o = half+1 .. nb
        run = jnp.zeros((1, tm), dtype=jnp.float32)
        for o in range(half + 1, nb + 1):
            run = run + x[o - 1:o, :]
            acc = acc + jnp.exp(jnp.clip(run, -40.0, 40.0))

        mean = acc * inv_cout
        out_ref[1:2, :] = mean
        out_ref[0:1, :] = jnp.log(mean)

    return kernel


def edi_layer(log_diff: jnp.ndarray, *, tile_spatial: int = 8192):
    """log_diff: (N, Cin, H, W) -> (log_integral, second_integral), each (N, 1, H, W)."""
    N, Cin, H, W = log_diff.shape
    S = H * W

    # Pure reshape (no data movement): channel-major with spatial in the lane axis.
    x = log_diff.reshape(N, Cin, S).astype(jnp.float32)

    # Lane-dense spatial tile: multiple of 128, clamped to the padded spatial extent.
    tm = max(128, (tile_spatial // 128) * 128)
    tm = min(tm, pl.cdiv(S, 128) * 128)
    S_pad = pl.cdiv(S, tm) * tm
    if S_pad != S:
        # Zero padding is harmless: it yields mean == 1, log == 0, and is sliced off.
        x = jnp.pad(x, ((0, 0), (0, 0), (0, S_pad - S)))

    grid = (N, S_pad // tm)

    out = pl.pallas_call(
        _make_edi_kernel(Cin),
        out_shape=jax.ShapeDtypeStruct((N, 2, S_pad), jnp.float32),
        grid=grid,
        in_specs=[pl.BlockSpec((None, Cin, tm), lambda n, s: (n, 0, s))],
        out_specs=pl.BlockSpec((None, 2, tm), lambda n, s: (n, 0, s)),
        compiler_params=pltpu.CompilerParams(
            dimension_semantics=("parallel", "parallel")),
    )(x)

    log_integral = out[:, 0:1, :S].reshape(N, 1, H, W)
    second_integral = out[:, 1:2, :S].reshape(N, 1, H, W)
    return log_integral, second_integral


if __name__ == "__main__":
    num_event_bins = 4
    N, H, W = 2, 16, 16

    key = jax.random.PRNGKey(0)
    log_diff = jax.random.normal(key, (N, num_event_bins, H, W), dtype=jnp.float32)

    log_integral, second_integral = edi_layer(log_diff)
    jax.block_until_ready((log_integral, second_integral))

    # Pure-JAX reference (1x1 conv == channel matmul with the fixed EDI weights).
    weights = make_edi_weights(num_event_bins)  # (Cout=5, Cin=4)
    y_ref = jnp.einsum("nchw,oc->nohw", log_diff, weights)
    y_ref = jnp.clip(y_ref, -40.0, 40.0)
    second_ref = jnp.exp(y_ref).mean(axis=1, keepdims=True)
    log_ref = jnp.log(second_ref)

    assert log_integral.shape == (N, 1, H, W)
    assert second_integral.shape == (N, 1, H, W)
    assert jnp.allclose(second_integral, second_ref, rtol=1e-5, atol=1e-5)
    assert jnp.allclose(log_integral, log_ref, rtol=1e-5, atol=1e-5)

    print("KERNEL_OK")
</pallas_src>

<mosaic_0001>
module attributes {stable_mosaic.version = 11 : i64} {
  func.func @kernel(%arg0: i32, %arg1: i32, %arg2: memref<1x4x256xf32, #tpu.memory_space<vmem>>, %arg3: memref<1x2x256xf32, #tpu.memory_space<vmem>>) attributes {dimension_semantics = [#tpu.dimension_semantics<parallel>, #tpu.dimension_semantics<parallel>], iteration_bounds = array<i64: 2, 1>, scalar_prefetch = 0 : i64, scratch_operands = 0 : i64, tpu.core_type = #tpu.core_type<tc>, window_params = [{transform_indices = @transform_0, window_bounds = array<i64: 1, 4, 256>}, {transform_indices = @transform_1, window_bounds = array<i64: 1, 2, 256>}]} {
    %c0 = arith.constant 0 : index
    %c0_0 = arith.constant 0 : index
    %c0_1 = arith.constant 0 : index
    %0 = vector.load %arg2[%c0, %c0_0, %c0_1] : memref<1x4x256xf32, #tpu.memory_space<vmem>>, vector<1x4x256xf32>
    %1 = vector.shape_cast %0 : vector<1x4x256xf32> to vector<4x256xf32>
    %cst = arith.constant 1.000000e+00 : f32
    %2 = vector.broadcast %cst : f32 to vector<1x256xf32>
    %cst_2 = arith.constant 0.000000e+00 : f32
    %3 = vector.broadcast %cst_2 : f32 to vector<1x256xf32>
    %4 = vector.extract_strided_slice %1 {offsets = [1, 0], sizes = [1, 256], strides = [1, 1]} : vector<4x256xf32> to vector<1x256xf32>
    %5 = arith.subf %3, %4 : vector<1x256xf32>
    %cst_3 = arith.constant -4.000000e+01 : f32
    %cst_4 = arith.constant 4.000000e+01 : f32
    %6 = vector.broadcast %cst_3 : f32 to vector<1x256xf32>
    %7 = arith.maximumf %6, %5 : vector<1x256xf32>
    %8 = vector.broadcast %cst_4 : f32 to vector<1x256xf32>
    %9 = arith.minimumf %8, %7 : vector<1x256xf32>
    %10 = math.exp %9 : vector<1x256xf32>
    %11 = arith.addf %2, %10 : vector<1x256xf32>
    %12 = vector.extract_strided_slice %1 {offsets = [0, 0], sizes = [1, 256], strides = [1, 1]} : vector<4x256xf32> to vector<1x256xf32>
    %13 = arith.subf %5, %12 : vector<1x256xf32>
    %cst_5 = arith.constant -4.000000e+01 : f32
    %cst_6 = arith.constant 4.000000e+01 : f32
    %14 = vector.broadcast %cst_5 : f32 to vector<1x256xf32>
    %15 = arith.maximumf %14, %13 : vector<1x256xf32>
    %16 = vector.broadcast %cst_6 : f32 to vector<1x256xf32>
    %17 = arith.minimumf %16, %15 : vector<1x256xf32>
    %18 = math.exp %17 : vector<1x256xf32>
    %19 = arith.addf %11, %18 : vector<1x256xf32>
    %cst_7 = arith.constant 0.000000e+00 : f32
    %20 = vector.broadcast %cst_7 : f32 to vector<1x256xf32>
    %21 = vector.extract_strided_slice %1 {offsets = [2, 0], sizes = [1, 256], strides = [1, 1]} : vector<4x256xf32> to vector<1x256xf32>
    %22 = arith.addf %20, %21 : vector<1x256xf32>
    %cst_8 = arith.constant -4.000000e+01 : f32
    %cst_9 = arith.constant 4.000000e+01 : f32
    %23 = vector.broadcast %cst_8 : f32 to vector<1x256xf32>
    %24 = arith.maximumf %23, %22 : vector<1x256xf32>
    %25 = vector.broadcast %cst_9 : f32 to vector<1x256xf32>
    %26 = arith.minimumf %25, %24 : vector<1x256xf32>
    %27 = math.exp %26 : vector<1x256xf32>
    %28 = arith.addf %19, %27 : vector<1x256xf32>
    %29 = vector.extract_strided_slice %1 {offsets = [3, 0], sizes = [1, 256], strides = [1, 1]} : vector<4x256xf32> to vector<1x256xf32>
    %30 = arith.addf %22, %29 : vector<1x256xf32>
    %cst_10 = arith.constant -4.000000e+01 : f32
    %cst_11 = arith.constant 4.000000e+01 : f32
    %31 = vector.broadcast %cst_10 : f32 to vector<1x256xf32>
    %32 = arith.maximumf %31, %30 : vector<1x256xf32>
    %33 = vector.broadcast %cst_11 : f32 to vector<1x256xf32>
    %34 = arith.minimumf %33, %32 : vector<1x256xf32>
    %35 = math.exp %34 : vector<1x256xf32>
    %36 = arith.addf %28, %35 : vector<1x256xf32>
    %cst_12 = arith.constant 2.000000e-01 : f32
    %37 = vector.broadcast %cst_12 : f32 to vector<1x256xf32>
    %38 = arith.mulf %36, %37 : vector<1x256xf32>
    %c0_13 = arith.constant 0 : index
    %c1 = arith.constant 1 : index
    %c0_14 = arith.constant 0 : index
    %39 = vector.load %arg3[%c0_13, %c1, %c0_14] : memref<1x2x256xf32, #tpu.memory_space<vmem>>, vector<1x1x256xf32>
    %40 = vector.shape_cast %39 : vector<1x1x256xf32> to vector<1x256xf32>
    %41 = vector.shape_cast %38 : vector<1x256xf32> to vector<1x1x256xf32>
    tpu.vector_store %arg3[%c0_13, %c1, %c0_14], %41 {strides = array<i32>} : memref<1x2x256xf32, #tpu.memory_space<vmem>>, vector<1x1x256xf32>,
    %42 = math.log %38 : vector<1x256xf32>
    %c0_15 = arith.constant 0 : index
    %c0_16 = arith.constant 0 : index
    %c0_17 = arith.constant 0 : index
    %43 = vector.load %arg3[%c0_15, %c0_16, %c0_17] : memref<1x2x256xf32, #tpu.memory_space<vmem>>, vector<1x1x256xf32>
    %44 = vector.shape_cast %43 : vector<1x1x256xf32> to vector<1x256xf32>
    %45 = vector.shape_cast %42 : vector<1x256xf32> to vector<1x1x256xf32>
    tpu.vector_store %arg3[%c0_15, %c0_16, %c0_17], %45 {strides = array<i32>} : memref<1x2x256xf32, #tpu.memory_space<vmem>>, vector<1x1x256xf32>,
    return
  }
  func.func @transform_0(%arg0: i32, %arg1: i32) -> (i32, i32, i32) {
    %c0_i32 = arith.constant 0 : i32
    %c0_i32_0 = arith.constant 0 : i32
    return %arg0, %c0_i32, %arg1 : i32, i32, i32
  }
  func.func @transform_1(%arg0: i32, %arg1: i32) -> (i32, i32, i32) {
    %c0_i32 = arith.constant 0 : i32
    %c0_i32_0 = arith.constant 0 : i32
    return %arg0, %c0_i32, %arg1 : i32, i32, i32
  }
}

</mosaic_0001>

<bundles_post_ra>
// kernel: tpu_custom_call.1
= control target key start
LH: loop header
LB: loop body
LE: loop exit
PB: predicated region body
PF: predicated region fallthrough
CT: control target
= control target key end

     0   :  { %6 = vsyncpa [#allocation3], 0  ;;  %s699_s0 = inlined_call_operand.hbm [shape: f32[2,4,256], index: 0, kind: input, shape index: {}]   ;;  %s700_s1 = inlined_call_operand.hbm [shape: f32[2,2,256], index: 1, kind: output, shape index: {}]  }
   0x1   :  { %8 = vsyncpa [#allocation3 + $0x1], 0 }
   0x2   :  { %9 = vsyncpa [#allocation4], 0 }
   0x3   :  { %11 = vsyncpa [#allocation4 + $0x1], 0  ;;  %s558_s6 = smov 0   ;;  %s560_s7 = smov 0  }
   0x4   :  { %s562_s8 = smov 0   ;;  %s564_s9 = smov 0  }
   0x5   :  { %s566_s10 = smov 0   ;;  %s568_s11 = smov 0  }
   0x6 LB: > { %s337_s12 = sadd.s32 4294967295, %s543_s11   ;;  %s338_s13 = sadd.s32 4294967294, %s543_s11   ;;  %s543_s11 = sphi %s568_s11, %s17_s11   ;;  %s539_s10 = sphi %s566_s10, %s712_s10   ;;  %s535_s9 = sphi %s564_s9, %s711_s9   ;;  %s531_s8 = sphi %s562_s8, %s710_s8   ;;  %s527_s7 = sphi %s560_s7, %s709_s7   ;;  %s523_s6 = sphi %s558_s6, %s708_s6  }
   0x7   : > { %s29_s14 = sadd.s32 1, %s539_s10  ;;  %s38_s15 = sadd.s32 1, %s531_s8 }
   0x8   : > { %p31_p0 = scmp.ge.s32.totalorder %s29_s14, 2  ;;  %p45_p1 = scmp.ne.s32.totalorder %s531_s8, %s527_s7 }
   0x9   : > { %p46_p2 = scmp.eq.s32.totalorder %s543_s11, 0  ;;  %p51_p3 = scmp.ne.s32.totalorder %s527_s7, %s523_s6 }
   0xa   : > { %s714_s14 = smov (%p31_p0, %s29_s14), 0  ;;  %p52_p5 = scmp.eq.s32.totalorder %s337_s12, 0 }
   0xb   : > { %p599_p4 = por %p46_p2, %p45_p1  ;;  %s33_s17 = ssub.s32 %s539_s10, %s714_s14 }
   0xc   : > { %p77_p6 = scmp.eq.s32.totalorder %s337_s12, 1  ;;  %p36_p7 = scmp.eq.s32.totalorder %s33_s17, 0 }
   0xd   : > { %p605_p8 = por %p52_p5, %p51_p3  ;;  %p83_p10 = scmp.eq.s32.totalorder %s338_s13, 1 }
   0xe   : > { %p609_p9 = por %p77_p6, %p45_p1  ;;  %p374_p13 = scmp.lt.s32.totalorder %s543_s11, 2 }
   0xf   : > { %s614_s20 = scalar_select %p36_p7, %s531_s8, %s38_s15  }
  0x10   : > { %p616_p11 = por %p83_p10, %p51_p3  ;;  %s103_s22 = sand.u32 1, %s531_s8  }
  0x11   : > { %s341_s23 = sshll.u32 %s103_s22, 3  ;;  %s360_s24 = sshll.u32 %s539_s10, 7 }
  0x12   : > { %s704_s21 = scalar_select %p616_p11, 1, 0 }
  0x13   : > { %s115_s27 = scalar_lea.hbm %s699_s0, %s360_s24  ;;  %s107_s28 = scalar_lea.vmem [#allocation2], %s341_s23 }
  0x14   : > { %s117_s29 = sshll.u32 %s107_s28, 4  ;;  %p629_p0 = pnand %p374_p13, %p599_p4  ;;  %s118_s29 = int_to_ptr.vmem [resolvable:$true] %s117_s29 }
  0x15   : > { %p344_p1 = scmp.ge.s32.totalorder %s543_s11, 1  ;;  %p122_p2 = scmp.lt.s32.totalorder %s543_s11, 3 }
  0x16   : > { %s104_s2 = scalar_lea.sflag [#allocation3], %s103_s22  ;;  %p437_p3 = pneg %p629_p0 }
  0x17   : > { %s448_s3 = scalar_lea.vmem %s118_s29, 128  ;;  %s545_s4 = smov [#allocation2]  }
  0x18   : > { %p449_p5 = scmp.ne.s32.totalorder %s118_s29, %s448_s3  ;;  %s453_s5 = sshll.u32 %s545_s4, 4  ;;  %s454_s5 = int_to_ptr.vmem [resolvable:$false] %s453_s5 }
  0x19   : > { %s455_s12 = scalar_lea.vmem %s454_s5, 256  ;;  %p456_p10 = scmp.lt.s32.totalorder %s118_s29, %s454_s5 }
  0x1a   : > { %p451_p6 = pnand %p449_p5, %p437_p3  ;;  %p457_p12 = scmp.lt.s32.totalorder %s455_s12, %s448_s3 }
  0x1c   : > { %p452_p7 = pneg %p451_p6  ;;  %p458_p4 = por %p457_p12, %p456_p10 }
  0x1e   : > { %p459_p13 = pnand %p458_p4, %p452_p7 }
  0x20   : > { %462 = shalt.err (!%p459_p13)
}
  0x21   : > { %369 = dma.hbm_to_vmem [thread:$0]  (!%p629_p0), %s115_s27, 128, %s118_s29, %s104_s2  }
  0x22   : > { %p123_p11 = pnand %p344_p1, %p122_p2 }
  0x23   : > { %s644_s13 = sand.u32 (!%p123_p11), 1, %s527_s7  }
  0x24   : > { %126 = sbr.rel (%p123_p11) target bundleno = 108 (0x6c), region = 24  ;;  %s345_s15 = sshll.u32 (!%p123_p11), %s644_s13, 3 }
  0x25   : > { %s129_s16 = scalar_lea.sflag (!%p123_p11), [#allocation3], %s644_s13  ;;  %s132_s17 = scalar_lea.vmem (!%p123_p11), [#allocation2], %s345_s15 }
  0x29   : > { %514 = dma.done.wait (%p605_p8), %s129_s16, 128  }
  0x2a   : > { %516 = vsyncadd (%p605_p8), %s129_s16, 4294967168  ;;  %v153_v0 = vld [vmem:[%s132_s17] sm:$0xff]  ;;  %v546_v15 = vmov 1966171168   ;;  %v197_v17 = vlaneseq  ;;  %s346_s18 = sshll.u32 %s644_s13, 2  ;;  %s361_s24 = sshll.u32 %s535_s9, 6 }
  0x2b   : > { %v154_v1 = vsub.f32 0.0, %v153_v0  ;;  %v161_v2 = vrot.slane %v153_v0, 7  ;;  %v349_v3 = vclamps-f32 %v153_v0, 40.0  ;;  %v351_v4 = vrot.slane %v153_v0, 9  ;;  %s150_s22 = scalar_lea.vmem [#allocation5], %s346_s18  ;;  %s251_s27 = scalar_lea.hbm %s700_s1, %s361_s24 }
  0x2c   : > { %v195_v16 = vunpack.c.l.s4 %v546_v15  ;;  %v198_v25 = vshrl.u32 %v197_v17, 7  ;;  %vm212_vm0 = vcmp.lt.s32.totalorder %v197_v17, 256  ;;  %s253_s23 = sshll.u32 %s150_s22, 4  ;;  %s237_s28 = scalar_lea.sflag [#allocation4], %s644_s13  ;;  %s654_s23 = int_to_ptr.vmem [resolvable:$true] %s253_s23 }
  0x2d   : > { %v347_v5 = vclamps-f32 %v154_v1, 40.0  ;;  %v163_v6 = vsub.f32 %v154_v1, %v161_v2  ;;  %v172_v7 = vmul.f32 1.442695, %v349_v3  ;;  %v182_v8 = vadd.f32 %v351_v4, %v153_v0  ;;  %s463_s29 = scalar_lea.vmem %s654_s23, 64  ;;  %s547_s30 = smov [#allocation5]  }
  0x2e   : > { %v196_v24 = vunpack.c.0.s8 %v195_v16  ;;  %p464_p8 = scmp.ne.s32.totalorder %s654_s23, %s463_s29  ;;  %s467_s9 = sshll.u32 %s547_s30, 4  ;;  %s468_s9 = int_to_ptr.vmem [resolvable:$false] %s467_s9 }
  0x2f   : > { %v157_v9 = vmul.f32 1.442695, %v347_v5  ;;  %v348_v10 = vclamps-f32 %v163_v6, 40.0  ;;  %425 = vpow2.f32 %v172_v7  ;;  %v352_v11 = vclamps-f32 %v182_v8, 40.0  ;;  %s469_s2 = scalar_lea.vmem %s468_s9, 128  ;;  %p470_p0 = scmp.lt.s32.totalorder %s654_s23, %s468_s9 }
  0x30   : > { %v199_v29 = vsub.s32 %v196_v24, %v198_v25  ;;  %p465_p11 = pnand %p464_p8, %p609_p9  ;;  %p471_p1 = scmp.lt.s32.totalorder %s469_s2, %s463_s29 }
  0x31   : > { %427 = vpow2.f32 %v157_v9  ;;  %v166_v12 = vmul.f32 1.442695, %v348_v10  ;;  %v185_v13 = vmul.f32 1.442695, %v352_v11 }
  0x32   : > { %p466_p12 = pneg %p465_p11  ;;  %p472_p2 = por %p471_p1, %p470_p0 }
  0x33   : > { %429 = vpow2.f32 %v166_v12 }
  0x34   : > { %431 = vpow2.f32 %v185_v13  ;;  %p473_p3 = pnand %p472_p2, %p466_p12 }
  0x3c   : > { %v426_v14 = vpop.eup %425 }
  0x3d   : > { %v350_v20 = vrot.slane %v426_v14, 9 }
  0x3e   : > { %v428_v18 = vpop.eup %427 }
  0x3f   : > { %v159_v19 = vadd.f32 1.0, %v428_v18 }
  0x40   : > { %v430_v21 = vpop.eup %429 }
  0x41   : > { %v432_v22 = vpop.eup %431  ;;  %v168_v23 = vadd.f32 %v430_v21, %v159_v19 }
  0x42   : > { %v353_v26 = vrot.slane %v432_v22, 9 }
  0x43   : > { %v178_v27 = vadd.f32 %v350_v20, %v168_v23 }
  0x45   : > { %v191_v28 = vadd.f32 %v353_v26, %v178_v27 }
  0x47   : > { %v192_v30 = vmul.f32 0.2, %v191_v28 }
  0x49   : > { %v200_v31 = vrot.slane %v192_v30, %v199_v29  ;;  %433 = vlog2.f32 %v192_v30 }
  0x4b   : > { %v201_v32 = vcombine.high %v200_v31, %v200_v31 }
  0x4d   : > { %v208_v33 = vrot.slane %v201_v32, %v199_v29 }
  0x4f   : > { %354 = vst.msk [vmem:[%s150_s22 + $0x1] ss:$2 sm:$0x3] %vm212_vm0, %v208_v33 }
  0x56   : > { %v434_v34 = vpop.eup %433 }
  0x57   : > { %v217_v35 = vmul.f32 0.6931472, %v434_v34 }
  0x59   : > { %v225_v36 = vrot.slane %v217_v35, %v199_v29 }
  0x5b   : > { %v226_v37 = vcombine.high %v225_v36, %v225_v36 }
  0x5d   : > { %v233_v38 = vrot.slane %v226_v37, %v199_v29 }
  0x5f   : > { %235 = vst.msk [vmem:[%s150_s22] ss:$2 sm:$0x3] %vm212_vm0, %v233_v38 }
  0x60   : > { %476 = shalt.err (!%p473_p3)
}
  0x61   : > { %s477_s3 = scalar_lea.hbm %s251_s27, 64  ;;  %s481_s12 = scalar_lea.hbm %s700_s1, 128 }
  0x62   : > { %p478_p5 = scmp.ne.s32.totalorder %s251_s27, %s477_s3  ;;  %p482_p10 = scmp.lt.s32.totalorder %s251_s27, %s700_s1 }
  0x63   : > { %p483_p4 = scmp.lt.s32.totalorder %s481_s12, %s477_s3 }
  0x64   : > { %p479_p6 = pnand %p478_p5, %p609_p9 }
  0x65   : > { %p484_p13 = por %p483_p4, %p482_p10 }
  0x66   : > { %p480_p7 = pneg %p479_p6 }
  0x68   : > { %p485_p8 = pnand %p484_p13, %p480_p7 }
  0x6a   : > { %488 = shalt.err (!%p485_p8)
}
  0x6b   : > { %364 = dma.vmem_to_hbm [thread:$0]  (%p609_p9), %s654_s23, 64, %s251_s27, %s237_s28  }
  0x6c PF: > { %s265_s16 = sand.u32 1, %s523_s6   ;;  %p706_p11 = scmp.ne.s32.totalorder %s704_s21, 0 }
  0x6d   : > { %p707_p12 = scmp.ge.s32.totalorder %s543_s11, 2  ;;  %s266_s17 = scalar_lea.sflag [#allocation4], %s265_s16 }
  0x6f   : > { %p371_p0 = pnand %p707_p12, %p706_p11 }
  0x71   : > { %p372_p1 = pneg %p371_p0 }
  0x73   : > { %518 = dma.done.wait (%p372_p1), %s266_s17, 64  }
  0x74   : > { %520 = vsyncadd (%p372_p1), %s266_s17, 4294967232  ;;  %s17_s11 = sadd.s32 1, %s543_s11   ;;  %s708_s6 = smov %s527_s7 }
  0x75   : > { %p14_p2 = scmp.ge.s32.totalorder %s17_s11, 4   ;;  %s709_s7 = smov %s531_s8 }
  0x76   : > { %s710_s8 = smov %s614_s20  ;;  %s711_s9 = smov %s539_s10 }
  0x77   : > { %s712_s10 = smov %s714_s14  ;;  %16 = sbr.rel (!%p14_p2) target bundleno = 6 (0x6), region = 70 }
  0x7c   :  { %271 = vsyncpa [#allocation3], 1 }
  0x7d   :  { %273 = vsyncpa [#allocation3 + $0x1], 1 }
  0x7e   :  { %274 = vsyncpa [#allocation4], 1 }
  0x7f   :  { %276 = vsyncpa [#allocation4 + $0x1], 1 }

</bundles_post_ra>
